<compile_context>
chip_gen: v6e
topology: v6e:2x2x1
jax: 0.10.0
libtpu: 0.0.40
codegen_flags: <defaults>
</compile_context>

<pallas_src>
import functools

import numpy as np
import jax
import jax.numpy as jnp
from jax import lax
from jax.experimental import pallas as pl
from jax.experimental.pallas import tpu as pltpu


# ---------------------------------------------------------------------------
# Deterministic parameter construction (librosa-style slaney mel filterbank,
# periodic Hann window) — no file loads.
# ---------------------------------------------------------------------------
def _hz_to_mel(f):
    f = np.asarray(f, dtype=np.float64)
    f_sp = 200.0 / 3.0
    mels = f / f_sp
    min_log_hz = 1000.0
    min_log_mel = min_log_hz / f_sp
    logstep = np.log(6.4) / 27.0
    return np.where(f >= min_log_hz,
                    min_log_mel + np.log(np.maximum(f, 1e-10) / min_log_hz) / logstep,
                    mels)


def _mel_to_hz(m):
    m = np.asarray(m, dtype=np.float64)
    f_sp = 200.0 / 3.0
    freqs = f_sp * m
    min_log_hz = 1000.0
    min_log_mel = min_log_hz / f_sp
    logstep = np.log(6.4) / 27.0
    return np.where(m >= min_log_mel,
                    min_log_hz * np.exp(logstep * (m - min_log_mel)),
                    freqs)


def mel_filterbank(sr, n_fft, n_mels, fmin=0.0, fmax=None):
    if fmax is None:
        fmax = sr / 2.0
    n_freq = n_fft // 2 + 1
    fftfreqs = np.linspace(0.0, sr / 2.0, n_freq)
    mel_pts = np.linspace(_hz_to_mel(fmin), _hz_to_mel(fmax), n_mels + 2)
    mel_f = _mel_to_hz(mel_pts)
    fdiff = np.diff(mel_f)
    ramps = mel_f[:, None] - fftfreqs[None, :]
    weights = np.zeros((n_mels, n_freq), dtype=np.float64)
    for i in range(n_mels):
        lower = -ramps[i] / fdiff[i]
        upper = ramps[i + 2] / fdiff[i + 1]
        weights[i] = np.maximum(0.0, np.minimum(lower, upper))
    enorm = 2.0 / (mel_f[2:n_mels + 2] - mel_f[:n_mels])  # slaney norm
    weights *= enorm[:, None]
    return weights.astype(np.float32)


def hann_window_periodic(win_size):
    n = np.arange(win_size, dtype=np.float64)
    return (0.5 - 0.5 * np.cos(2.0 * np.pi * n / win_size)).astype(np.float32)


def _round_up(x, m):
    return ((x + m - 1) // m) * m


def _cdiv(a, b):
    return (a + b - 1) // b


# ---------------------------------------------------------------------------
# Pallas kernel: in-VMEM frame assembly + fused packed-STFT matmul + magnitude
# + mel projection (+ explicit Nyquist) + log-clamp.
# ---------------------------------------------------------------------------
def _mel_kernel(main_ref, halo_ref, w_ref, melp_ref, nyq_ref, out_ref,
                *, r, tm, halo_rows):
    main = main_ref[0]                                    # (TM, hop)
    if r > 1:
        halo = halo_ref[0][:halo_rows, :]                 # (halo_rows, hop), aligned slice
        full = jnp.concatenate([main, halo], axis=0)      # (TM + halo_rows, hop)
        # frames[:, j*hop:(j+1)*hop] = rows j..j+TM-1 of the hop-row stream.
        frames = jnp.concatenate([full[j:j + tm, :] for j in range(r)],
                                 axis=-1)                 # (TM, fft)
    else:
        frames = main                                     # hop == fft: rows are the frames

    # Single fused packed-STFT matmul (cos bins 0..H | sin bins 1..H-1, window folded in).
    y = jnp.dot(frames, w_ref[...], preferred_element_type=jnp.float32)   # (TM, fft) f32
    H = y.shape[-1] // 2
    yl = y[:, :H]                                         # re of bins 0..H-1 (128-aligned)
    yr = y[:, H:]                                         # [re Nyquist | im bins 1..H-1]
    lane = lax.broadcasted_iota(jnp.int32, yr.shape, 1)
    im = jnp.where(lane == 0, 0.0, yr)                    # DC imag is exactly 0
    mag = jnp.sqrt(yl * yl + im * im + 1e-9)              # (TM, H)  bins 0..H-1
    nyq_re = yr[:, :1]                                    # Nyquist real part (imag == 0)
    mag_nyq = jnp.sqrt(nyq_re * nyq_re + 1e-9)            # (TM, 1)

    mel = jnp.dot(mag.astype(melp_ref.dtype), melp_ref[...],
                  preferred_element_type=jnp.float32)     # (TM, nm_pad) lane-dense
    mel = mel + mag_nyq * nyq_ref[...]                    # Nyquist bin: VPU broadcast FMA
    out_ref[0] = jnp.log(jnp.maximum(mel, 1e-5))


class MelSpectrogramPallas:
    def __init__(self, sr, fft, mel_channel, win_size, hop_size, fmin=0.0, fmax=None,
                 compute_dtype=jnp.float32, tile_m=512):
        assert fft % 256 == 0, "packed-frequency layout requires fft to be a multiple of 256"
        assert win_size <= fft
        assert tile_m % 128 == 0, "tile_m should be a multiple of 128 (MXU-friendly)"
        self.sr = sr
        self.fft = fft
        self.hop = hop_size
        self.win_size = win_size
        self.n_mels = mel_channel
        self.n_freq = fft // 2 + 1
        self.H = fft // 2
        self.nm_pad = _round_up(mel_channel, 128)     # lane-dense output width
        self.compute_dtype = compute_dtype            # bf16 optional on v5e/v6e/v7x (looser tol)
        self.tile_m = tile_m

        mel_basis = mel_filterbank(sr, fft, mel_channel, fmin, fmax)   # (n_mels, n_freq)
        window = hann_window_periodic(win_size)
        # torch.stft zero-pads a shorter window to n_fft, centered
        left = (fft - win_size) // 2
        win_full = np.zeros(fft, dtype=np.float64)
        win_full[left:left + win_size] = window

        n = np.arange(fft, dtype=np.float64)[:, None]
        H = self.H
        # Packed DFT basis (fft, fft): [cos bins 0..H | sin bins 1..H-1], window folded in
        # (sin of DC and Nyquist are exactly 0 and are dropped).
        k_cos = np.arange(H + 1, dtype=np.float64)[None, :]
        k_sin = np.arange(1, H, dtype=np.float64)[None, :]
        wcos = win_full[:, None] * np.cos(2.0 * np.pi * n * k_cos / fft)   # (fft, H+1)
        wsin = win_full[:, None] * np.sin(2.0 * np.pi * n * k_sin / fft)   # (fft, H-1)
        w_packed = np.concatenate([wcos, wsin], axis=1).astype(np.float32)  # (fft, fft)
        assert w_packed.shape == (fft, fft)

        # Mel projection for bins 0..H-1 only; the Nyquist bin H gets its own row
        # (added in-kernel with a broadcast FMA) — no reliance on zero padding rows.
        melp_lo = np.zeros((H, self.nm_pad), dtype=np.float32)
        melp_lo[:, :mel_channel] = mel_basis[:, :H].T
        nyq_row = np.zeros((1, self.nm_pad), dtype=np.float32)
        nyq_row[0, :mel_channel] = mel_basis[:, H]

        self.w_packed = jnp.asarray(w_packed, dtype=compute_dtype)
        self.melp_lo = jnp.asarray(melp_lo, dtype=compute_dtype)
        self.nyq_row = jnp.asarray(nyq_row, dtype=jnp.float32)

        itemsize = jnp.dtype(compute_dtype).itemsize
        self._weight_bytes = (fft * fft + H * self.nm_pad + self.nm_pad) * itemsize
        # Single-buffer the constant weights only when they are big enough to matter
        # (fft >= 1024); irrelevant (and therefore not risked) at small fft.
        self._single_buffer_weights = self._weight_bytes >= (4 << 20)

        # Unpacked f32 copies for the pure-JAX reference.
        k_all = np.arange(self.n_freq, dtype=np.float64)[None, :]
        self._ref_wcos = jnp.asarray(
            (win_full[:, None] * np.cos(2.0 * np.pi * n * k_all / fft)).astype(np.float32))
        self._ref_wsin = jnp.asarray(
            (win_full[:, None] * np.sin(2.0 * np.pi * n * k_all / fft)).astype(np.float32))
        self.mel_basis = jnp.asarray(mel_basis)

    # Constant-weight BlockSpec (index_map is constant -> fetched once).
    def _const_spec(self, shape):
        idx = lambda b, i: (0, 0)
        if self._single_buffer_weights:
            # Halve the weight VMEM footprint for large-fft configs (v7x 64 MiB budget).
            return pl.BlockSpec(shape, idx, pipeline_mode=pl.Buffered(buffer_count=1))
        return pl.BlockSpec(shape, idx)

    def __call__(self, x):
        # x: (B, T) float32
        B, T = x.shape
        fft, hop = self.fft, self.hop
        if fft % hop != 0:
            # TODO(synk): hop not dividing fft needs gather-based framing; fall back to the
            # pure-JAX path (correct but slow) instead of a fake fused kernel.
            return self.reference(x)
        r = fft // hop
        pad = (fft - hop) // 2
        xp = jnp.pad(x, ((0, 0), (pad, pad)), mode="reflect")
        Tp = T + 2 * pad
        F = (Tp - fft) // hop + 1
        assert F >= 1, "input too short for one STFT frame"

        # --- frame-tile size ---------------------------------------------------
        halo_rows = _round_up(max(r - 1, 1), 8)
        if F >= 128:
            TM = min(self.tile_m, _round_up(F, 128))
        else:
            TM = _round_up(F, 8)
        if B * _cdiv(F, TM) < 2 and F > 8:
            TM = _round_up(_cdiv(F, 2), 8)        # keep >= 2 grid steps (v7x 2-TC sharding)
        TM = max(TM, halo_rows)
        nblk = _cdiv(F, TM)
        F_pad = nblk * TM

        # --- hop-row layout of the padded signal: NO fft/hop-times inflation ----
        R_used = F + r - 1                         # hop-rows actually needed
        R_pad = (nblk + 1) * TM                    # +1 block so the halo read stays in-bounds
        rows = xp[:, :R_used * hop].reshape(B, R_used, hop).astype(self.compute_dtype)
        rows = jnp.pad(rows, ((0, 0), (0, R_pad - R_used), (0, 0)))

        nm_pad = self.nm_pad
        kern = functools.partial(_mel_kernel, r=r, tm=TM, halo_rows=halo_rows)

        flops = 2 * B * F_pad * (fft * fft + self.H * nm_pad)
        transc = B * F_pad * (self.H + 1 + nm_pad)
        bytes_acc = (2 * rows.size * rows.dtype.itemsize          # main + halo streams
                     + self._weight_bytes
                     + B * F_pad * nm_pad * 4)
        ce = pl.CostEstimate(flops=int(flops), transcendentals=int(transc),
                             bytes_accessed=int(bytes_acc))

        compiler_kwargs = dict(dimension_semantics=("parallel", "parallel"))
        wbuf = self._weight_bytes * (1 if self._single_buffer_weights else 2)
        step_bytes = (wbuf
                      + 2 * 2 * TM * hop * rows.dtype.itemsize     # main+halo double buffers
                      + 2 * TM * nm_pad * 4                        # out double buffer
                      + 4 * TM * fft * 4)                          # frames/y/mag intermediates
        if step_bytes > (28 << 20):
            # Only pin the limit for large-fft configs that exceed the scoped default.
            compiler_kwargs["vmem_limit_bytes"] = int(step_bytes + (8 << 20))

        out = pl.pallas_call(
            kern,
            out_shape=jax.ShapeDtypeStruct((B, F_pad, nm_pad), jnp.float32),
            grid=(B, nblk),
            in_specs=[
                pl.BlockSpec((1, TM, hop), lambda b, i: (b, i, 0)),      # main hop-rows
                pl.BlockSpec((1, TM, hop), lambda b, i: (b, i + 1, 0)),  # halo = next block
                self._const_spec((fft, fft)),                            # packed DFT basis
                self._const_spec((self.H, nm_pad)),                      # mel proj (bins 0..H-1)
                self._const_spec((1, nm_pad)),                           # mel row for Nyquist bin
            ],
            out_specs=pl.BlockSpec((1, TM, nm_pad), lambda b, i: (b, i, 0)),
            compiler_params=pltpu.CompilerParams(**compiler_kwargs),
            cost_estimate=ce,
        )(rows, rows, self.w_packed, self.melp_lo, self.nyq_row)

        mel = out[:, :F, :self.n_mels]                # (B, F, n_mels)
        return jnp.transpose(mel, (0, 2, 1))          # (B, n_mels, num_frames)

    # Pure-JAX reference (same math, no Pallas) for verification.
    def reference(self, x):
        B, T = x.shape
        fft, hop = self.fft, self.hop
        pad = (fft - hop) // 2
        xp = jnp.pad(x, ((0, 0), (pad, pad)), mode="reflect")
        Tp = T + 2 * pad
        F = (Tp - fft) // hop + 1
        idx = (np.arange(F)[:, None] * hop + np.arange(fft)[None, :])
        frames = xp[:, idx]                                           # (B, F, fft)
        re = jnp.einsum("bfn,nk->bfk", frames, self._ref_wcos)
        im = jnp.einsum("bfn,nk->bfk", frames, self._ref_wsin)
        mag = jnp.sqrt(re * re + im * im + 1e-9)                      # (B, F, n_freq)
        mel = jnp.einsum("mk,bfk->bmf", self.mel_basis, mag)          # (B, n_mels, F)
        return jnp.log(jnp.maximum(mel, 1e-5))


if __name__ == "__main__":
    sr = 16000
    fft = 256
    n_mels = 32
    win_size = 256
    hop_size = 64
    B, T = 2, 1024

    key = jax.random.PRNGKey(0)
    x = jax.random.normal(key, (B, T), dtype=jnp.float32)

    mod = MelSpectrogramPallas(sr, fft, n_mels, win_size, hop_size)
    y = jax.block_until_ready(mod(x))

    y_ref = jax.block_until_ready(mod.reference(x))
    assert y.shape == y_ref.shape, (y.shape, y_ref.shape)
    np.testing.assert_allclose(np.asarray(y), np.asarray(y_ref), rtol=2e-4, atol=2e-4)

    print("KERNEL_OK")
</pallas_src>

<mosaic_0001>
module attributes {stable_mosaic.version = 11 : i64} {
  func.func @_mel_kernel(%arg0: i32, %arg1: i32, %arg2: memref<1x16x64xf32, #tpu.memory_space<vmem>>, %arg3: memref<1x16x64xf32, #tpu.memory_space<vmem>>, %arg4: memref<256x256xf32, #tpu.memory_space<vmem>>, %arg5: memref<128x128xf32, #tpu.memory_space<vmem>>, %arg6: memref<1x128xf32, #tpu.memory_space<vmem>>, %arg7: memref<1x16x128xf32, #tpu.memory_space<vmem>>) attributes {dimension_semantics = [#tpu.dimension_semantics<parallel>, #tpu.dimension_semantics<parallel>], iteration_bounds = array<i64: 2, 1>, scalar_prefetch = 0 : i64, scratch_operands = 0 : i64, tpu.core_type = #tpu.core_type<tc>, window_params = [{transform_indices = @transform_0, window_bounds = array<i64: 1, 16, 64>}, {transform_indices = @transform_1, window_bounds = array<i64: 1, 16, 64>}, {pipeline_mode = #tpu.pipeline_mode<synchronous>, transform_indices = @transform_2, window_bounds = array<i64: 256, 256>}, {pipeline_mode = #tpu.pipeline_mode<synchronous>, transform_indices = @transform_3, window_bounds = array<i64: 128, 128>}, {pipeline_mode = #tpu.pipeline_mode<synchronous>, transform_indices = @transform_4, window_bounds = array<i64: 1, 128>}, {transform_indices = @transform_5, window_bounds = array<i64: 1, 16, 128>}]} {
    %c0 = arith.constant 0 : index
    %c0_0 = arith.constant 0 : index
    %c0_1 = arith.constant 0 : index
    %0 = vector.load %arg2[%c0, %c0_0, %c0_1] : memref<1x16x64xf32, #tpu.memory_space<vmem>>, vector<1x16x64xf32>
    %1 = vector.shape_cast %0 : vector<1x16x64xf32> to vector<16x64xf32>
    %c0_2 = arith.constant 0 : index
    %c0_3 = arith.constant 0 : index
    %c0_4 = arith.constant 0 : index
    %2 = vector.load %arg3[%c0_2, %c0_3, %c0_4] : memref<1x16x64xf32, #tpu.memory_space<vmem>>, vector<1x16x64xf32>
    %3 = vector.shape_cast %2 : vector<1x16x64xf32> to vector<16x64xf32>
    %4 = vector.extract_strided_slice %3 {offsets = [0, 0], sizes = [8, 64], strides = [1, 1]} : vector<16x64xf32> to vector<8x64xf32>
    %5 = tpu.concatenate %1, %4 in 0 : vector<16x64xf32>, vector<8x64xf32> -> vector<24x64xf32>
    %6 = vector.extract_strided_slice %5 {offsets = [0, 0], sizes = [16, 64], strides = [1, 1]} : vector<24x64xf32> to vector<16x64xf32>
    %7 = vector.extract_strided_slice %5 {offsets = [1, 0], sizes = [16, 64], strides = [1, 1]} : vector<24x64xf32> to vector<16x64xf32>
    %8 = vector.extract_strided_slice %5 {offsets = [2, 0], sizes = [16, 64], strides = [1, 1]} : vector<24x64xf32> to vector<16x64xf32>
    %9 = vector.extract_strided_slice %5 {offsets = [3, 0], sizes = [16, 64], strides = [1, 1]} : vector<24x64xf32> to vector<16x64xf32>
    %10 = tpu.concatenate %6, %7, %8, %9 in 1 : vector<16x64xf32>, vector<16x64xf32>, vector<16x64xf32>, vector<16x64xf32> -> vector<16x256xf32>
    %c0_5 = arith.constant 0 : index
    %c0_6 = arith.constant 0 : index
    %11 = vector.load %arg4[%c0_5, %c0_6] : memref<256x256xf32, #tpu.memory_space<vmem>>, vector<256x256xf32>
    %cst = arith.constant dense<0.000000e+00> : vector<16x256xf32>
    %12 = tpu.matmul %10, %11, %cst {dimension_numbers = #tpu.dot_dimension_numbers<[1], [0], [0], [1], [0, 0, 1, 1], [], []>} : vector<16x256xf32>, vector<256x256xf32>, vector<16x256xf32> -> vector<16x256xf32>
    %13 = vector.extract_strided_slice %12 {offsets = [0, 0], sizes = [16, 128], strides = [1, 1]} : vector<16x256xf32> to vector<16x128xf32>
    %14 = vector.extract_strided_slice %12 {offsets = [0, 128], sizes = [16, 128], strides = [1, 1]} : vector<16x256xf32> to vector<16x128xf32>
    %15 = tpu.iota {dimensions = array<i32: 1>} : vector<16x128xi32>
    %c0_i32 = arith.constant 0 : i32
    %16 = vector.broadcast %c0_i32 : i32 to vector<16x128xi32>
    %17 = arith.cmpi eq, %15, %16 : vector<16x128xi32>
    %cst_7 = arith.constant 0.000000e+00 : f32
    %18 = vector.broadcast %cst_7 : f32 to vector<16x128xf32>
    %19 = arith.select %17, %18, %14 : vector<16x128xi1>, vector<16x128xf32>
    %20 = arith.mulf %13, %13 : vector<16x128xf32>
    %21 = arith.mulf %19, %19 : vector<16x128xf32>
    %22 = arith.addf %20, %21 : vector<16x128xf32>
    %cst_8 = arith.constant 9.99999971E-10 : f32
    %23 = vector.broadcast %cst_8 : f32 to vector<16x128xf32>
    %24 = arith.addf %22, %23 : vector<16x128xf32>
    %25 = math.sqrt %24 : vector<16x128xf32>
    %26 = vector.extract_strided_slice %14 {offsets = [0, 0], sizes = [16, 1], strides = [1, 1]} : vector<16x128xf32> to vector<16x1xf32>
    %27 = arith.mulf %26, %26 : vector<16x1xf32>
    %cst_9 = arith.constant 9.99999971E-10 : f32
    %28 = vector.broadcast %cst_9 : f32 to vector<16x1xf32>
    %29 = arith.addf %27, %28 : vector<16x1xf32>
    %30 = math.sqrt %29 : vector<16x1xf32>
    %c0_10 = arith.constant 0 : index
    %c0_11 = arith.constant 0 : index
    %31 = vector.load %arg5[%c0_10, %c0_11] : memref<128x128xf32, #tpu.memory_space<vmem>>, vector<128x128xf32>
    %cst_12 = arith.constant dense<0.000000e+00> : vector<16x128xf32>
    %32 = tpu.matmul %25, %31, %cst_12 {dimension_numbers = #tpu.dot_dimension_numbers<[1], [0], [0], [1], [0, 0, 1, 1], [], []>} : vector<16x128xf32>, vector<128x128xf32>, vector<16x128xf32> -> vector<16x128xf32>
    %c0_13 = arith.constant 0 : index
    %c0_14 = arith.constant 0 : index
    %33 = vector.load %arg6[%c0_13, %c0_14] : memref<1x128xf32, #tpu.memory_space<vmem>>, vector<1x128xf32>
    %34 = vector.broadcast %30 : vector<16x1xf32> to vector<16x128xf32>
    %35 = vector.broadcast %33 : vector<1x128xf32> to vector<16x128xf32>
    %36 = arith.mulf %34, %35 : vector<16x128xf32>
    %37 = arith.addf %32, %36 : vector<16x128xf32>
    %cst_15 = arith.constant 9.99999974E-6 : f32
    %38 = vector.broadcast %cst_15 : f32 to vector<16x128xf32>
    %39 = arith.maximumf %37, %38 : vector<16x128xf32>
    %40 = math.log %39 : vector<16x128xf32>
    %c0_16 = arith.constant 0 : index
    %c0_17 = arith.constant 0 : index
    %c0_18 = arith.constant 0 : index
    %41 = vector.load %arg7[%c0_16, %c0_17, %c0_18] : memref<1x16x128xf32, #tpu.memory_space<vmem>>, vector<1x16x128xf32>
    %42 = vector.shape_cast %41 : vector<1x16x128xf32> to vector<16x128xf32>
    %43 = vector.shape_cast %40 : vector<16x128xf32> to vector<1x16x128xf32>
    tpu.vector_store %arg7[%c0_16, %c0_17, %c0_18], %43 {strides = array<i32>} : memref<1x16x128xf32, #tpu.memory_space<vmem>>, vector<1x16x128xf32>,
    return
  }
  func.func @transform_0(%arg0: i32, %arg1: i32) -> (i32, i32, i32) {
    %c0_i32 = arith.constant 0 : i32
    %c0_i32_0 = arith.constant 0 : i32
    return %arg0, %arg1, %c0_i32 : i32, i32, i32
  }
  func.func @transform_1(%arg0: i32, %arg1: i32) -> (i32, i32, i32) {
    %c1_i32 = arith.constant 1 : i32
    %0 = arith.addi %arg1, %c1_i32 : i32
    %c0_i32 = arith.constant 0 : i32
    %c0_i32_0 = arith.constant 0 : i32
    return %arg0, %0, %c0_i32 : i32, i32, i32
  }
  func.func @transform_2(%arg0: i32, %arg1: i32) -> (i32, i32) {
    %c0_i32 = arith.constant 0 : i32
    %c0_i32_0 = arith.constant 0 : i32
    %c0_i32_1 = arith.constant 0 : i32
    return %c0_i32, %c0_i32_0 : i32, i32
  }
  func.func @transform_3(%arg0: i32, %arg1: i32) -> (i32, i32) {
    %c0_i32 = arith.constant 0 : i32
    %c0_i32_0 = arith.constant 0 : i32
    %c0_i32_1 = arith.constant 0 : i32
    return %c0_i32, %c0_i32_0 : i32, i32
  }
  func.func @transform_4(%arg0: i32, %arg1: i32) -> (i32, i32) {
    %c0_i32 = arith.constant 0 : i32
    %c0_i32_0 = arith.constant 0 : i32
    %c0_i32_1 = arith.constant 0 : i32
    return %c0_i32, %c0_i32_0 : i32, i32
  }
  func.func @transform_5(%arg0: i32, %arg1: i32) -> (i32, i32, i32) {
    %c0_i32 = arith.constant 0 : i32
    %c0_i32_0 = arith.constant 0 : i32
    return %arg0, %arg1, %c0_i32 : i32, i32, i32
  }
}

</mosaic_0001>

<bundles_post_ra>
// kernel: tpu_custom_call.1
= control target key start
LH: loop header
LB: loop body
LE: loop exit
PB: predicated region body
PF: predicated region fallthrough
CT: control target
= control target key end

     0   :  { %s1533_s0 = inlined_call_operand.hbm [shape: f32[2,32,64], index: 0, kind: input, shape index: {}]   ;;  %s1534_s1 = inlined_call_operand.hbm [shape: f32[2,32,64], index: 1, kind: input, shape index: {}]   ;;  %s1535_s2 = inlined_call_operand.hbm [shape: f32[256,256], index: 2, kind: input, shape index: {}]   ;;  %s1536_s3 = inlined_call_operand.hbm [shape: f32[128,128], index: 3, kind: input, shape index: {}]   ;;  %s1537_s4 = inlined_call_operand.vmem [shape: f32[1,128], index: 4, kind: input, shape index: {}]   ;;  %s1538_s5 = inlined_call_operand.hbm [shape: f32[2,16,128], index: 5, kind: output, shape index: {}]  }
   0x1   :  { %1545 = sst [smem:[#allocation17_spill]] %s1533_s0 }
   0x2   :  { %1546 = sst [smem:[#allocation18_spill]] %s1534_s1 }
   0x3   :  { %1547 = sst [smem:[#allocation19_spill]] %s1535_s2 }
   0x4   :  { %1548 = sst [smem:[#allocation20_spill]] %s1536_s3 }
   0x5   :  { %10 = vsyncpa [#allocation3], 0 }
   0x6   :  { %12 = vsyncpa [#allocation3 + $0x1], 0 }
   0x7   :  { %13 = vsyncpa [#allocation6], 0 }
   0x8   :  { %15 = vsyncpa [#allocation6 + $0x1], 0 }
   0x9   :  { %16 = vsyncpa [#allocation9], 0 }
   0xa   :  { %17 = vsyncpa [#allocation4], 0 }
   0xb   :  { %19 = vsyncpa [#allocation4 + $0x1], 0  ;;  %s1283_s18 = smov 0   ;;  %s1285_s19 = smov 0  }
   0xc   :  { %s1287_s20 = smov 0   ;;  %s1289_s21 = smov 0  }
   0xd   :  { %s1291_s22 = smov 0   ;;  %s1293_s23 = smov 0  }
   0xe LB: > { %s1314_s24 = sadd.s32 4294967295, %s1238_s23   ;;  %s838_s25 = sadd.s32 4294967294, %s1238_s23   ;;  %s1238_s23 = sphi %s1293_s23, %s25_s23   ;;  %s1234_s22 = sphi %s1291_s22, %s1574_s22   ;;  %s1230_s21 = sphi %s1289_s21, %s1573_s21   ;;  %s1226_s20 = sphi %s1287_s20, %s1572_s20   ;;  %s1222_s19 = sphi %s1285_s19, %s1571_s19   ;;  %s1218_s18 = sphi %s1283_s18, %s1570_s18  }
   0xf   : > { %p59_p0 = scmp.ne.s32.totalorder %s1222_s19, %s1218_s18  ;;  %p1539_p1 = scmp.eq.s32.totalorder %s1314_s24, 0 }
  0x10   : > { %p184_p3 = scmp.eq.s32.totalorder %s838_s25, 1  ;;  %p839_p5 = scmp.ge.s32.totalorder %s1238_s23, 1 }
  0x11   : > { %p1323_p4 = por %p1539_p1, %p59_p0  ;;  %p191_p7 = scmp.lt.s32.totalorder %s1238_s23, 3 }
  0x12   : > { %p1328_p6 = por %p184_p3, %p59_p0  ;;  %s1240_s29 = smov [#allocation7]  }
  0x13   : > { %p1333_p8 = pnand %p839_p5, %p191_p7  ;;  %s203_s30 = sshll.u32 %s1240_s29, 4  ;;  %s204_s30 = int_to_ptr.vmem [resolvable:$true] %s203_s30 }
  0x14   : > { %s1550_s27 = scalar_select %p1328_p6, 1, 0 }
  0x15   : > { %p931_p9 = pneg %p1333_p8  ;;  %s1241_s7 = smov [#allocation8]  }
  0x16   : > { %s216_s8 = sshll.u32 %s1241_s7, 4  ;;  %s1048_s9 = scalar_lea.vmem %s204_s30, 8192  ;;  %s217_s8 = int_to_ptr.vmem [resolvable:$true] %s216_s8 }
  0x17   : > { %p1342_p11 = pnand %p931_p9, %p1539_p1  ;;  %p1049_p13 = scmp.ne.s32.totalorder %s204_s30, %s1048_s9 }
  0x18   : > { %p1056_p5 = scmp.lt.s32.totalorder %s204_s30, %s204_s30  ;;  %p1057_p7 = scmp.lt.s32.totalorder %s1048_s9, %s1048_s9 }
  0x19   : > { %p1039_p12 = pneg %p1342_p11 }
  0x1a   : > { %p1058_p10 = por %p1057_p7, %p1056_p5 }
  0x1b   : > { %p1051_p0 = pnand %p1049_p13, %p1039_p12 }
  0x1d   : > { %p1052_p3 = pneg %p1051_p0 }
  0x1f   : > { %p1059_p9 = pnand %p1058_p10, %p1052_p3 }
  0x21   : > { %1062 = shalt.err (!%p1059_p9)
}
  0x22   : > { %s1242_s10 = smov 256   ;;  %s1243_s11 = smov 16  }
  0x23   : > { %s1553_s2 = sld [smem:[#allocation19_spill]]  ;;  %s1074_s14 = scalar_lea.vmem %s217_s8, 2048 }
  0x24   : > { %p1075_p1 = scmp.ne.s32.totalorder %s217_s8, %s1074_s14  ;;  %p1082_p2 = scmp.lt.s32.totalorder %s217_s8, %s217_s8 }
  0x25   : > { %p1083_p6 = scmp.lt.s32.totalorder %s1074_s14, %s1074_s14 }
  0x26   : > { %p1077_p13 = pnand %p1075_p1, %p1039_p12 }
  0x27   : > { %p1084_p5 = por %p1083_p6, %p1082_p2 }
  0x28   : > { %p1078_p0 = pneg %p1077_p13 }
  0x29   : > { %934 = dma.hbm_to_vmem [thread:$0]  (!%p1342_p11), %s1553_s2, 8192, %s204_s30, [#allocation6], %s1242_s10, %s1242_s10, %s1243_s11  }
  0x2a   : > { %p1085_p10 = pnand %p1084_p5, %p1078_p0 }
  0x2c   : > { %1088 = shalt.err (!%p1085_p10)
}
  0x2d   : > { %s1540_s15 = smov 128   ;;  %s1542_s16 = smov 8  }
  0x2e   : > { %s1554_s3 = sld [smem:[#allocation20_spill]]  ;;  %s37_s29 = sadd.s32 1, %s1234_s22 }
  0x2f   : > { %s46_s30 = sadd.s32 1, %s1226_s20  ;;  %p39_p1 = scmp.ge.s32.totalorder %s37_s29, 2 }
  0x30   : > { %p53_p2 = scmp.ne.s32.totalorder %s1226_s20, %s1222_s19  ;;  %p54_p6 = scmp.eq.s32.totalorder %s1238_s23, 0 }
  0x31   : > { %p951_p12 = scmp.lt.s32.totalorder %s1238_s23, 2  ;;  %s1576_s29 = smov (%p39_p1, %s37_s29), 0 }
  0x32   : > { %1555 = sst [smem:[#allocation16_spill]] %s1576_s29  ;;  %p55_p3 = por %p54_p6, %p53_p2 }
  0x33   : > { %p1556_p7 = scmp.eq.s32.totalorder %s1314_s24, 1  ;;  %s41_s7 = ssub.s32 %s1234_s22, %s1576_s29 }
  0x34   : > { %937 = dma.hbm_to_vmem [thread:$0]  (!%p1342_p11), %s1554_s3, 2048, %s217_s8, [#allocation9], %s1540_s15, %s1540_s15, %s1542_s16  }
  0x35   : > { %p1377_p9 = por %p1556_p7, %p53_p2  ;;  %s233_s9 = sand.u32 1, %s1226_s20  }
  0x36   : > { %p44_p13 = scmp.eq.s32.totalorder %s41_s7, 0  ;;  %s1384_s8 = sshll.u32 %s233_s9, 4 }
  0x37   : > { %s861_s10 = sshll.u32 %s1234_s22, 9  ;;  %s1558_s0 = sld [smem:[#allocation17_spill]] }
  0x38   : > { %s1388_s11 = scalar_select %p44_p13, %s1226_s20, %s46_s30  }
  0x39   : > { %s237_s17 = scalar_lea.vmem [#allocation2], %s1384_s8  ;;  %p1396_p11 = pnand %p951_p12, %p55_p3 }
  0x3a   : > { %s246_s25 = sshll.u32 %s237_s17, 4  ;;  %s1560_s1 = sld [smem:[#allocation18_spill]]  ;;  %s247_s25 = int_to_ptr.vmem [resolvable:$true] %s246_s25 }
  0x3b   : > { %s234_s30 = scalar_lea.sflag [#allocation3], %s233_s9  ;;  %p1091_p0 = pneg %p1396_p11 }
  0x3c   : > { %s1102_s12 = scalar_lea.vmem %s247_s25, 256  ;;  %s1246_s13 = smov [#allocation2]  }
  0x3d   : > { %s245_s14 = scalar_lea.hbm %s1558_s0, %s861_s10  ;;  %p1103_p5 = scmp.ne.s32.totalorder %s247_s25, %s1102_s12 }
  0x3e   : > { %s1107_s17 = sshll.u32 %s1246_s13, 4  ;;  %s1108_s17 = int_to_ptr.vmem [resolvable:$false] %s1107_s17 }
  0x3f   : > { %p1105_p10 = pnand %p1103_p5, %p1091_p0  ;;  %s1109_s0 = scalar_lea.vmem %s1108_s17, 512 }
  0x40   : > { %s1403_s2 = scalar_lea.hbm %s1560_s1, %s861_s10  ;;  %p1110_p2 = scmp.lt.s32.totalorder %s247_s25, %s1108_s17 }
  0x41   : > { %p1106_p1 = pneg %p1105_p10  ;;  %p1111_p6 = scmp.lt.s32.totalorder %s1109_s0, %s1102_s12 }
  0x43   : > { %p1112_p12 = por %p1111_p6, %p1110_p2 }
  0x45   : > { %p1113_p3 = pnand %p1112_p12, %p1106_p1 }
  0x47   : > { %1116 = shalt.err (!%p1113_p3)
}
  0x48   : > { %s1561_s16 = smov 8   ;;  %s1562_s9 = smov 128  }
  0x49   : > { %941 = dma.hbm_to_vmem [thread:$0]  (!%p1396_p11), %s245_s14, 256, %s247_s25, %s234_s30, %s1562_s9, %s1562_s9, %s1561_s16  }
  0x4a   : > { %s751_s10 = scalar_lea.hbm %s1403_s2, 256  ;;  %s260_s7 = scalar_lea.vmem [#allocation5], %s1384_s8 }
  0x4b   : > { %s270_s13 = sshll.u32 %s260_s7, 4  ;;  %s256_s1 = sand.u32 1, %s1238_s23   ;;  %s271_s13 = int_to_ptr.vmem [resolvable:$true] %s270_s13 }
  0x4c   : > { %s257_s17 = scalar_lea.sflag [#allocation6], %s256_s1  ;;  %s1130_s0 = scalar_lea.vmem %s271_s13, 256 }
  0x4d   : > { %p1131_p7 = scmp.ne.s32.totalorder %s271_s13, %s1130_s0  ;;  %s1247_s12 = smov [#allocation5]  }
  0x4e   : > { %s1135_s3 = sshll.u32 %s1247_s12, 4  ;;  %s1136_s3 = int_to_ptr.vmem [resolvable:$false] %s1135_s3 }
  0x4f   : > { %p1133_p13 = pnand %p1131_p7, %p1091_p0  ;;  %s1137_s29 = scalar_lea.vmem %s1136_s3, 512 }
  0x50   : > { %p1138_p10 = scmp.lt.s32.totalorder %s271_s13, %s1136_s3  ;;  %p1139_p1 = scmp.lt.s32.totalorder %s1137_s29, %s1130_s0 }
  0x51   : > { %p1134_p5 = pneg %p1133_p13 }
  0x52   : > { %p1140_p2 = por %p1139_p1, %p1138_p10 }
  0x54   : > { %p1141_p6 = pnand %p1140_p2, %p1134_p5 }
  0x56   : > { %1144 = shalt.err (!%p1141_p6)
}
  0x57   : > { %944 = dma.hbm_to_vmem [thread:$0]  (!%p1396_p11), %s751_s10, 256, %s271_s13, %s257_s17, %s1562_s9, %s1562_s9, %s1561_s16  }
  0x58   : > { %282 = sbr.rel (%p1333_p8) target bundleno = 682 (0x2aa), region = 40  ;;  %s1429_s1 = sand.u32 (!%p1333_p8), 1, %s1222_s19  }
  0x59   : > { %s1432_s2 = sshll.u32 (!%p1333_p8), %s1429_s1, 4  ;;  %s285_s3 = scalar_lea.sflag (!%p1333_p8), [#allocation3], %s1429_s1 }
  0x5a   : > { %s288_s29 = scalar_lea.vmem (!%p1333_p8), [#allocation2], %s1432_s2 }
  0x5d   : > { %1197 = dma.done.wait (%p1323_p4), %s285_s3, 256  }
  0x5e   : > { %1199 = vsyncadd (%p1323_p4), %s285_s3, 4294967040  ;;  %s293_s28 = sand.u32 1, %s1314_s24   ;;  %s297_s8 = scalar_lea.vmem [#allocation5], %s1432_s2 }
  0x5f   : > { %s294_s15 = scalar_lea.sflag [#allocation6], %s293_s28 }
  0x60   : > { %1201 = dma.done.wait (%p1323_p4), %s294_s15, 256  }
  0x61   : > { %1203 = vsyncadd (%p1323_p4), %s294_s15, 4294967040  ;;  %p1563_p8 = scmp.eq.s32.totalorder %s1314_s24, 0 }
  0x63   : > { %1205 = dma.done.wait (%p1563_p8), [#allocation6], 8192   ;;  %p1564_p11 = pmov %p1563_p8 }
  0x64   : > { %p1565_p0 = pmov %p1563_p8 }
  0x65   : > { %1207 = vsyncadd (%p1564_p11), [#allocation6], 4294959104 }
  0x66   : > { %1209 = dma.done.wait (%p1565_p0), [#allocation9], 2048   ;;  %p1566_p12 = pmov %p1565_p0 }
  0x67   : > { %v1454_v0 = vld [vmem:[%s288_s29] sm:$0xff]  ;;  %v1456_v1 = vld [vmem:[%s288_s29 + $0x8] sm:$0xff]  ;;  %vm347_vm0 = vcmask 1046528   ;;  %vm367_vm1 = vcmask 1044480   ;;  %s1248_s24 = smov 64   ;;  %vm359_vm2 = vcmask 1045504  }
  0x68   : > { %1211 = vsyncadd (%p1566_p12), [#allocation9], 4294965248  ;;  %v1458_v2 = vld [vmem:[%s297_s8] sm:$0xff]  ;;  %v348_v3 = vrot.slane %v1454_v0, 1  ;;  %v349_v4 = vrot.slane %v1456_v1, 1  ;;  %v368_v5 = vrot.slane %v1454_v0, 3 }
  0x69   : > { %v369_v6 = vrot.slane %v1456_v1, 3  ;;  %v415_v7 = vld [vmem:[#allocation7 + $0xf8] sm:$0xff]  ;;  %v414_v8 = vld [vmem:[#allocation7 + $0xf0] sm:$0xff]  ;;  %v351_v9 = vrot.slane %v1458_v2, 1  ;;  %v371_v10 = vrot.slane %v1458_v2, 3  ;;  %v413_v11 = vld [vmem:[#allocation7 + $0xe8] sm:$0xff] }
  0x6a   : > { %448 = vmatprep.subr.mxu0 %v415_v7  ;;  %v412_v12 = vld [vmem:[#allocation7 + $0xe0] sm:$0xff]  ;;  %v350_v13 = vsel %vm347_vm0, %v348_v3, %v349_v4  ;;  %v411_v15 = vld [vmem:[#allocation7 + $0xd8] sm:$0xff]  ;;  %v410_v19 = vld [vmem:[#allocation7 + $0xd0] sm:$0xff]  ;;  %vm379_vm3 = vcmask 523264   ;;  %s336_s25 = scalar_lea.vmem [#allocation10], %s1432_s2  ;;  %s863_s16 = sshll.u32 %s1230_s21, 8 }
  0x6b   : > { %v370_v14 = vsel %vm367_vm1, %v368_v5, %v369_v6  ;;  %449 = vmatpush1.msra.mxu0 %v414_v8  ;;  %v352_v17 = vsel %vm347_vm0, %v349_v4, %v351_v9  ;;  %v372_v18 = vsel %vm367_vm1, %v369_v6, %v371_v10  ;;  %v409_v20 = vld [vmem:[#allocation7 + $0xc8] sm:$0xff]  ;;  %v408_v22 = vld [vmem:[#allocation7 + $0xc0] sm:$0xff]  ;;  %v407_v23 = vld [vmem:[#allocation7 + $0xb8] sm:$0xff]  ;;  %s704_s30 = sshll.u32 %s336_s25, 4  ;;  %s1485_s7 = scalar_lea.hbm %s1538_s5, %s863_s16  ;;  %s1480_s30 = int_to_ptr.vmem [resolvable:$true] %s704_s30 }
  0x6c   : > { %v1013_v16 = vpack.i.bf16 %v350_v13, %v370_v14  ;;  %450 = vmatprep.subr.mxu0 %v413_v11  ;;  %v1018_v21 = vpack.i.bf16 %v352_v17, %v372_v18  ;;  %v406_v24 = vld [vmem:[#allocation7 + $0xb0] sm:$0xff]  ;;  %v405_v25 = vld [vmem:[#allocation7 + $0xa8] sm:$0xff]  ;;  %v404_v26 = vld [vmem:[#allocation7 + $0xa0] sm:$0xff]  ;;  %v360_v18 = vrot.slane %v1454_v0, 2  ;;  %s689_s13 = scalar_lea.sflag [#allocation4], %s1429_s1  ;;  %s1146_s17 = scalar_lea.vmem %s1480_s30, 256 }
  0x6d   : > { %451 = vmatpush1.msra.mxu0 %v412_v12  ;;  %v403_v27 = vld [vmem:[#allocation7 + $0x98] sm:$0xff]  ;;  %v402_v28 = vld [vmem:[#allocation7 + $0x90] sm:$0xff]  ;;  %v401_v29 = vld [vmem:[#allocation7 + $0x88] sm:$0xff]  ;;  %p1147_p4 = scmp.ne.s32.totalorder %s1480_s30, %s1146_s17  ;;  %s1250_s21 = smov [#allocation10]  }
  0x6e   : > { %1014 = vrot.lane.b32.xlu0 %v1013_v16, %s1248_s24  ;;  %452 = vmatprep.subr.mxu0 %v411_v15  ;;  %v400_v30 = vld [vmem:[#allocation7 + $0x80] sm:$0xff]  ;;  %v399_v31 = vld [vmem:[#allocation7 + $0x78] sm:$0xff]  ;;  %v398_v32 = vld [vmem:[#allocation7 + $0x70] sm:$0xff]  ;;  %s1150_s0 = sshll.u32 %s1250_s21, 4  ;;  %s1151_s0 = int_to_ptr.vmem [resolvable:$false] %s1150_s0 }
  0x6f   : > { %453 = vmatpush1.msra.mxu0 %v410_v19  ;;  %v397_v33 = vld [vmem:[#allocation7 + $0x68] sm:$0xff]  ;;  %v396_v34 = vld [vmem:[#allocation7 + $0x60] sm:$0xff]  ;;  %v395_v35 = vld [vmem:[#allocation7 + $0x58] sm:$0xff]  ;;  %v361_v19 = vrot.slane %v1456_v1, 2  ;;  %p1148_p3 = pnand %p1147_p4, %p1377_p9  ;;  %s1152_s12 = scalar_lea.vmem %s1151_s0, 512 }
  0x70   : > { %454 = vmatprep.subr.mxu0 %v409_v20  ;;  %v394_v36 = vld [vmem:[#allocation7 + $0x50] sm:$0xff]  ;;  %v393_v37 = vld [vmem:[#allocation7 + $0x48] sm:$0xff]  ;;  %v392_v38 = vld [vmem:[#allocation7 + $0x40] sm:$0xff]  ;;  %p1153_p13 = scmp.lt.s32.totalorder %s1480_s30, %s1151_s0  ;;  %p1154_p5 = scmp.lt.s32.totalorder %s1152_s12, %s1146_s17 }
  0x71   : > { %455 = vmatpush1.msra.mxu0 %v408_v22  ;;  %v391_v39 = vld [vmem:[#allocation7 + $0x38] sm:$0xff]  ;;  %v390_v40 = vld [vmem:[#allocation7 + $0x30] sm:$0xff]  ;;  %v389_v41 = vld [vmem:[#allocation7 + $0x28] sm:$0xff]  ;;  %v363_v22 = vrot.slane %v1458_v2, 2  ;;  %p1149_p7 = pneg %p1148_p3 }
  0x72   : > { %1019 = vrot.lane.b32.xlu0 %v1018_v21, %s1248_s24  ;;  %456 = vmatprep.subr.mxu0 %v407_v23  ;;  %v388_v42 = vld [vmem:[#allocation7 + $0x20] sm:$0xff]  ;;  %v387_v43 = vld [vmem:[#allocation7 + $0x18] sm:$0xff]  ;;  %v386_v44 = vld [vmem:[#allocation7 + $0x10] sm:$0xff]  ;;  %v362_v21 = vsel %vm359_vm2, %v360_v18, %v361_v19  ;;  %p1155_p10 = por %p1154_p5, %p1153_p13 }
  0x73   : > { %457 = vmatpush1.msra.mxu0 %v406_v24  ;;  %v385_v45 = vld [vmem:[#allocation7 + $0x8] sm:$0xff]  ;;  %v384_v46 = vld [vmem:[#allocation7] sm:$0xff]  ;;  %v447_v47 = vld [vmem:[#allocation7 + $0x1f8] sm:$0xff] }
  0x74   : > { %458 = vmatprep.subr.mxu0 %v405_v25  ;;  %v446_v48 = vld [vmem:[#allocation7 + $0x1f0] sm:$0xff]  ;;  %v445_v49 = vld [vmem:[#allocation7 + $0x1e8] sm:$0xff]  ;;  %v444_v50 = vld [vmem:[#allocation7 + $0x1e0] sm:$0xff]  ;;  %p1156_p1 = pnand %p1155_p10, %p1149_p7 }
  0x75   : > { %459 = vmatpush1.msra.mxu0 %v404_v26  ;;  %v443_v51 = vld [vmem:[#allocation7 + $0x1d8] sm:$0xff]  ;;  %v442_v52 = vld [vmem:[#allocation7 + $0x1d0] sm:$0xff]  ;;  %v441_v53 = vld [vmem:[#allocation7 + $0x1c8] sm:$0xff] }
  0x76   : > { %460 = vmatprep.subr.mxu0 %v403_v27  ;;  %v440_v54 = vld [vmem:[#allocation7 + $0x1c0] sm:$0xff]  ;;  %v439_v55 = vld [vmem:[#allocation7 + $0x1b8] sm:$0xff]  ;;  %v438_v56 = vld [vmem:[#allocation7 + $0x1b0] sm:$0xff] }
  0x77   : > { %461 = vmatpush1.msra.mxu0 %v402_v28  ;;  %v437_v57 = vld [vmem:[#allocation7 + $0x1a8] sm:$0xff]  ;;  %v436_v58 = vld [vmem:[#allocation7 + $0x1a0] sm:$0xff]  ;;  %v435_v59 = vld [vmem:[#allocation7 + $0x198] sm:$0xff]  ;;  %v364_v28 = vsel %vm359_vm2, %v361_v19, %v363_v22 }
  0x78   : > { %462 = vmatprep.subr.mxu0 %v401_v29  ;;  %v434_v60 = vld [vmem:[#allocation7 + $0x190] sm:$0xff]  ;;  %v433_v61 = vld [vmem:[#allocation7 + $0x188] sm:$0xff]  ;;  %v432_v62 = vld [vmem:[#allocation7 + $0x180] sm:$0xff] }
  0x79   : > { %463 = vmatpush1.msra.mxu0 %v400_v30  ;;  %v431_v63 = vld [vmem:[#allocation7 + $0x178] sm:$0xff]  ;;  %v430_v3 = vld [vmem:[#allocation7 + $0x170] sm:$0xff]  ;;  %v429_v4 = vld [vmem:[#allocation7 + $0x168] sm:$0xff] }
  0x7a   : > { %464 = vmatprep.subr.mxu0 %v399_v31  ;;  %v428_v5 = vld [vmem:[#allocation7 + $0x160] sm:$0xff]  ;;  %v427_v6 = vld [vmem:[#allocation7 + $0x158] sm:$0xff]  ;;  %v426_v7 = vld [vmem:[#allocation7 + $0x150] sm:$0xff] }
  0x7b   : > { %465 = vmatpush1.msra.mxu0 %v398_v32  ;;  %v425_v8 = vld [vmem:[#allocation7 + $0x148] sm:$0xff]  ;;  %v424_v9 = vld [vmem:[#allocation7 + $0x140] sm:$0xff]  ;;  %v423_v10 = vld [vmem:[#allocation7 + $0x138] sm:$0xff] }
  0x7c   : > { %466 = vmatprep.subr.mxu0 %v397_v33  ;;  %v422_v11 = vld [vmem:[#allocation7 + $0x130] sm:$0xff]  ;;  %v421_v12 = vld [vmem:[#allocation7 + $0x128] sm:$0xff]  ;;  %v420_v13 = vld [vmem:[#allocation7 + $0x120] sm:$0xff] }
  0x7d   : > { %467 = vmatpush1.msra.mxu0 %v396_v34  ;;  %v419_v14 = vld [vmem:[#allocation7 + $0x118] sm:$0xff]  ;;  %v418_v15 = vld [vmem:[#allocation7 + $0x110] sm:$0xff]  ;;  %v417_v16 = vld [vmem:[#allocation7 + $0x108] sm:$0xff] }
  0x7e   : > { %468 = vmatprep.subr.mxu0 %v395_v35  ;;  %v416_v17 = vld [vmem:[#allocation7 + $0x100] sm:$0xff]  ;;  %v585_v33 = vld [vmem:[#allocation8 + $0x78] sm:$0xff]  ;;  %v584_v2 = vld [vmem:[#allocation8 + $0x70] sm:$0xff] }
  0x7f   : > { %469 = vmatpush1.msra.mxu0 %v394_v36  ;;  %882 = vmatprep.subr.mxu1 %v585_v33  ;;  %v583_v34 = vld [vmem:[#allocation8 + $0x68] sm:$0xff]  ;;  %v581_v35 = vld [vmem:[#allocation8 + $0x58] sm:$0xff]  ;;  %v580_v36 = vld [vmem:[#allocation8 + $0x50] sm:$0xff] }
  0x80   : > { %470 = vmatprep.subr.mxu0 %v393_v37  ;;  %883 = vmatpush3.msra.mxu1 %v585_v33  ;;  %v578_v37 = vld [vmem:[#allocation8 + $0x40] sm:$0xff] }
  0x81   : > { %471 = vmatpush1.msra.mxu0 %v392_v38  ;;  %884 = vmatprep.subr.mxu1 %v584_v2  ;;  %v577_v38 = vld [vmem:[#allocation8 + $0x38] sm:$0xff] }
  0x82   : > { %472 = vmatprep.subr.mxu0 %v391_v39  ;;  %885 = vmatpush3.msra.mxu1 %v584_v2  ;;  %v576_v39 = vld [vmem:[#allocation8 + $0x30] sm:$0xff] }
  0x83   : > { %473 = vmatpush1.msra.mxu0 %v390_v40  ;;  %886 = vmatprep.subr.mxu1 %v583_v34  ;;  %v1249_v40 = vmov 0  }
  0x84   : > { %474 = vmatprep.subr.mxu0 %v389_v41  ;;  %887 = vmatpush3.msra.mxu1 %v583_v34  ;;  %v575_v41 = vld [vmem:[#allocation8 + $0x28] sm:$0xff] }
  0x85   : > { %475 = vmatpush1.msra.mxu0 %v388_v42  ;;  %1023 = vset.pattern.permute.xlu1 %v1249_v40  ;;  %v574_v42 = vld [vmem:[#allocation8 + $0x20] sm:$0xff] }
  0x86   : > { %476 = vmatprep.subr.mxu0 %v387_v43  ;;  %1024 = vset.pattern.permute.xlu0 %v1249_v40  ;;  %v573_v43 = vld [vmem:[#allocation8 + $0x18] sm:$0xff] }
  0x87   : > { %477 = vmatpush1.msra.mxu0 %v386_v44  ;;  %v572_v44 = vld [vmem:[#allocation8 + $0x10] sm:$0xff] }
  0x88   : > { %478 = vmatprep.subr.mxu0 %v385_v45  ;;  %v571_v45 = vld [vmem:[#allocation8 + $0x8] sm:$0xff] }
  0x89   : > { %479 = vmatpush1.msra.mxu0 %v384_v46  ;;  %v570_v46 = vld [vmem:[#allocation8] sm:$0xff] }
  0x8a   : > { %480 = vmatprep.subr.mxu0 %v447_v47  ;;  %v525_v47 = vlaneseq }
  0x8b   : > { %481 = vmatpush2.msra.mxu0 %v446_v48 }
  0x8c   : > { %482 = vmatprep.subr.mxu0 %v445_v49  ;;  %v526_v48 = vand.u32 127, %v525_v47 }
  0x8d   : > { %483 = vmatpush2.msra.mxu0 %v444_v50 }
  0x8e   : > { %484 = vmatprep.subr.mxu0 %v443_v51  ;;  %vm527_vm4 = vcmp.eq.s32.totalorder %v526_v48, 0 }
  0x8f   : > { %485 = vmatpush2.msra.mxu0 %v442_v52 }
  0x90   : > { %486 = vmatprep.subr.mxu0 %v441_v53 }
  0x91   : > { %487 = vmatpush2.msra.mxu0 %v440_v54 }
  0x92   : > { %488 = vmatprep.subr.mxu0 %v439_v55 }
  0x93   : > { %489 = vmatpush2.msra.mxu0 %v438_v56 }
  0x94   : > { %490 = vmatprep.subr.mxu0 %v437_v57 }
  0x95   : > { %491 = vmatpush2.msra.mxu0 %v436_v58 }
  0x96   : > { %492 = vmatprep.subr.mxu0 %v435_v59 }
  0x97   : > { %493 = vmatpush2.msra.mxu0 %v434_v60 }
  0x98   : > { %494 = vmatprep.subr.mxu0 %v433_v61 }
  0x99   : > { %495 = vmatpush2.msra.mxu0 %v432_v62 }
  0x9a   : > { %496 = vmatprep.subr.mxu0 %v431_v63 }
  0x9b   : > { %497 = vmatpush2.msra.mxu0 %v430_v3 }
  0x9c   : > { %498 = vmatprep.subr.mxu0 %v429_v4 }
  0x9d   : > { %499 = vmatpush2.msra.mxu0 %v428_v5 }
  0x9e   : > { %500 = vmatprep.subr.mxu0 %v427_v6 }
  0x9f   : > { %501 = vmatpush2.msra.mxu0 %v426_v7 }
  0xa0   : > { %502 = vmatprep.subr.mxu0 %v425_v8 }
  0xa1   : > { %503 = vmatpush2.msra.mxu0 %v424_v9 }
  0xa2   : > { %504 = vmatprep.subr.mxu0 %v423_v10 }
  0xa3   : > { %505 = vmatpush2.msra.mxu0 %v422_v11 }
  0xa4   : > { %506 = vmatprep.subr.mxu0 %v421_v12 }
  0xa5   : > { %507 = vmatpush2.msra.mxu0 %v420_v13 }
  0xa6   : > { %508 = vmatprep.subr.mxu0 %v419_v14 }
  0xa7   : > { %509 = vmatpush2.msra.mxu0 %v418_v15 }
  0xa8   : > { %510 = vmatprep.subr.mxu0 %v417_v16 }
  0xa9   : > { %511 = vmatpush2.msra.mxu0 %v416_v17 }
  0xe0   : > { %v1015_v20 = vpop.permute.xlu0 %1014 }
  0xe1   : > { %v1017_v23 = vunpack.i.h.bf16 %v1015_v20  ;;  %v1016_v24 = vunpack.i.l.bf16 %v1015_v20 }
  0xe3   : > { %v382_v25 = vsel %vm379_vm3, %v362_v21, %v1016_v24  ;;  %v380_v26 = vsel %vm379_vm3, %v1454_v0, %v1017_v23  ;;  %v582_v0 = vld [vmem:[#allocation8 + $0x60] sm:$0xff] }
  0xe4   : > { %v1020_v27 = vpop.permute.xlu0 %1019  ;;  %512 = vmatprep.mubr.f32.mxu0 %v382_v25  ;;  %888 = vmatprep.subr.mxu1 %v582_v0 }
  0xe5   : > { %v1022_v29 = vunpack.i.h.bf16 %v1020_v27  ;;  %v1021_v30 = vunpack.i.l.bf16 %v1020_v27  ;;  %513 = vmatmul.mubr.f32.vlgmr.msra.gmra.mxu0 %v380_v26  ;;  %889 = vmatpush3.msra.mxu1 %v582_v0 }
  0xe6   : > { %890 = vmatprep.subr.mxu1 %v581_v35 }
  0xe7   : > { %v383_v31 = vsel %vm379_vm3, %v364_v28, %v1021_v30  ;;  %v381_v32 = vsel %vm379_vm3, %v1456_v1, %v1022_v29  ;;  %891 = vmatpush3.msra.mxu1 %v581_v35  ;;  %v579_v1 = vld [vmem:[#allocation8 + $0x48] sm:$0xff]  ;;  %v855_v28 = vld [vmem:[%s1537_s4] ss:$0 sm:$0xff] }
  0xe8   : > { %518 = vmatprep.mubr.f32.mxu0 %v383_v31  ;;  %892 = vmatprep.subr.mxu1 %v580_v36 }
  0xe9   : > { %519 = vmatmul.mubr.f32.gmra.mxu0 %v381_v32  ;;  %893 = vmatpush3.msra.mxu1 %v580_v36 }
  0xea   : > { %894 = vmatprep.subr.mxu1 %v579_v1 }
  0xeb   : > { %895 = vmatpush3.msra.mxu1 %v579_v1 }
  0xec   : > { %896 = vmatprep.subr.mxu1 %v578_v37 }
  0xed   : > { %897 = vmatpush3.msra.mxu1 %v578_v37 }
  0xee   : > { %898 = vmatprep.subr.mxu1 %v577_v38 }
  0xef   : > { %899 = vmatpush3.msra.mxu1 %v577_v38 }
  0xf0   : > { %900 = vmatprep.subr.mxu1 %v576_v39 }
  0xf1   : > { %901 = vmatpush3.msra.mxu1 %v576_v39 }
  0xf2   : > { %902 = vmatprep.subr.mxu1 %v575_v41 }
  0xf3   : > { %903 = vmatpush3.msra.mxu1 %v575_v41 }
  0xf4   : > { %904 = vmatprep.subr.mxu1 %v574_v42 }
  0xf5   : > { %905 = vmatpush3.msra.mxu1 %v574_v42 }
  0xf6   : > { %906 = vmatprep.subr.mxu1 %v573_v43 }
  0xf7   : > { %907 = vmatpush3.msra.mxu1 %v573_v43 }
  0xf8   : > { %908 = vmatprep.subr.mxu1 %v572_v44 }
  0xf9   : > { %909 = vmatpush3.msra.mxu1 %v572_v44 }
  0xfa   : > { %910 = vmatprep.subr.mxu1 %v571_v45 }
  0xfb   : > { %911 = vmatpush3.msra.mxu1 %v571_v45 }
  0xfc   : > { %912 = vmatprep.subr.mxu1 %v570_v46 }
  0xfd   : > { %913 = vmatpush3.msra.mxu1 %v570_v46 }
 0x1a5   : > { %v514_v49 = vpop.f32.mrf.mxu0 }
 0x1a6   : > { %v530_v53 = vmul.f32 %v514_v49, %v514_v49 }
 0x1a7   : > { %v516_v50 = vpop.f32.mrf.mxu0 }
 0x1a8   : > { %v552_v51 = vmul.f32 %v516_v50, %v516_v50  ;;  %v528_v52 = vsel %vm527_vm4, 0.0, %v516_v50 }
 0x1a9   : > { %v520_v54 = vpop.f32.mrf.mxu0  ;;  %v532_v55 = vmul.f32 %v528_v52, %v528_v52 }
 0x1aa   : > { %v554_v56 = vadd.f32 1e-09, %v552_v51  ;;  %v531_v61 = vmul.f32 %v520_v54, %v520_v54 }
 0x1ab   : > { %v522_v57 = vpop.f32.mrf.mxu0  ;;  %v534_v58 = vadd.f32 %v532_v55, %v530_v53 }
 0x1ac   : > { %1025 = vrsqrt.f32 %v554_v56  ;;  %v529_v59 = vsel %vm527_vm4, 0.0, %v522_v57  ;;  %v553_v60 = vmul.f32 %v522_v57, %v522_v57  ;;  %vm558_vm5 = vcmp.eq.f32.partialorder %v554_v56, inf }
 0x1ad   : > { %v533_v62 = vmul.f32 %v529_v59, %v529_v59  ;;  %v536_v63 = vadd.f32 1e-09, %v534_v58  ;;  %v561_v8 = vand.u32 2147483648, %v554_v56  ;;  %vm560_vm6 = vcmp.eq.f32.partialorder %v554_v56, 0.0 }
 0x1ae   : > { %v555_v3 = vadd.f32 1e-09, %v553_v60 }
 0x1af   : > { %v535_v4 = vadd.f32 %v533_v62, %v531_v61  ;;  %1027 = vrsqrt.f32 %v536_v63  ;;  %vm540_vm7 = vcmp.eq.f32.partialorder %v536_v63, inf  ;;  %v543_v14 = vand.u32 2147483648, %v536_v63 }
 0x1b0   : > { %1029 = vrsqrt.f32 %v555_v3  ;;  %vm542_vm8 = vcmp.eq.f32.partialorder %v536_v63, 0.0  ;;  %vm565_vm9 = vcmp.eq.f32.partialorder %v555_v3, inf  ;;  %v568_v17 = vand.u32 2147483648, %v555_v3 }
 0x1b1   : > { %v537_v5 = vadd.f32 1e-09, %v535_v4  ;;  %vm567_vm10 = vcmp.eq.f32.partialorder %v555_v3, 0.0 }
 0x1b3   : > { %1031 = vrsqrt.f32 %v537_v5  ;;  %vm547_vm11 = vcmp.eq.f32.partialorder %v537_v5, inf  ;;  %v550_v23 = vand.u32 2147483648, %v537_v5  ;;  %vm549_vm12 = vcmp.eq.f32.partialorder %v537_v5, 0.0 }
 0x1b9   : > { %v1026_v6 = vpop.eup %1025 }
 0x1ba   : > { %v557_v7 = vmul.f32 %v1026_v6, %v554_v56 }
 0x1bc   : > { %v1028_v9 = vpop.eup %1027  ;;  %v559_v10 = vsel %vm558_vm5, %v554_v56, %v557_v7 }
 0x1bd   : > { %v1030_v11 = vpop.eup %1029  ;;  %v562_v12 = vsel %vm560_vm6, %v561_v8, %v559_v10  ;;  %v539_v13 = vmul.f32 %v1028_v9, %v536_v63 }
 0x1be   : > { %589 = vperm.xlu1 %1023, %v562_v12   ;;  %v564_v15 = vmul.f32 %v1030_v11, %v555_v3 }
 0x1bf   : > { %v541_v16 = vsel %vm540_vm7, %v536_v63, %v539_v13 }
 0x1c0   : > { %v1032_v18 = vpop.eup %1031  ;;  %v544_v19 = vsel %vm542_vm8, %v543_v14, %v541_v16  ;;  %v566_v20 = vsel %vm565_vm9, %v555_v3, %v564_v15 }
 0x1c1   : > { %914 = vmatprep.mubr.f32.mxu1 %v544_v19  ;;  %v569_v21 = vsel %vm567_vm10, %v568_v17, %v566_v20  ;;  %v546_v22 = vmul.f32 %v1032_v18, %v537_v5 }
 0x1c2   : > { %594 = vperm.xlu1 %1023, %v569_v21  }
 0x1c3   : > { %v548_v24 = vsel %vm547_vm11, %v537_v5, %v546_v22 }
 0x1c4   : > { %v551_v25 = vsel %vm549_vm12, %v550_v23, %v548_v24 }
 0x1c5   : > { %915 = vmatmul.mubr.f32.vlgmr.msra.gmra.mxu1 %v551_v25 }
 0x239   : > { %v590_v26 = vpop.permute.xlu1 %589 }
 0x23a   : > { %v603_v31 = vmul.f32 %v855_v28, %v590_v26 }
 0x23d   : > { %v595_v27 = vpop.permute.xlu1 %594 }
 0x23e   : > { %v604_v29 = vmul.f32 %v855_v28, %v595_v27 }
 0x285   : > { %v916_v30 = vpop.f32.mrf.mxu1 }
 0x286   : > { %v677_v32 = vadd.f32 %v916_v30, %v604_v29 }
 0x287   : > { %v671_v33 = vpop.f32.mrf.mxu1 }
 0x288   : > { %v681_v2 = vmax.f32 %v677_v32, 1e-05  ;;  %v672_v34 = vadd.f32 %v671_v33, %v603_v31 }
 0x28a   : > { %1033 = vlog2.f32 %v681_v2  ;;  %v680_v0 = vmax.f32 %v672_v34, 1e-05 }
 0x28c   : > { %1035 = vlog2.f32 %v680_v0 }
 0x297   : > { %v1034_v35 = vpop.eup %1033 }
 0x298   : > { %v685_v36 = vmul.f32 0.6931472, %v1034_v35 }
 0x299   : > { %v1036_v1 = vpop.eup %1035 }
 0x29a   : > { %687 = vst [vmem:[%s336_s25 + $0x8] sm:$0xff] %v685_v36  ;;  %v683_v37 = vmul.f32 0.6931472, %v1036_v1 }
 0x29c   : > { %686 = vst [vmem:[%s336_s25] sm:$0xff] %v683_v37 }
 0x29d   : > { %1159 = shalt.err (!%p1156_p1)
}
 0x29e   : > { %s1160_s2 = scalar_lea.hbm %s1485_s7, 256  ;;  %s1164_s28 = scalar_lea.hbm %s1538_s5, 512 }
 0x29f   : > { %p1161_p2 = scmp.ne.s32.totalorder %s1485_s7, %s1160_s2  ;;  %p1165_p11 = scmp.lt.s32.totalorder %s1485_s7, %s1538_s5 }
 0x2a0   : > { %p1166_p0 = scmp.lt.s32.totalorder %s1164_s28, %s1160_s2 }
 0x2a1   : > { %p1162_p6 = pnand %p1161_p2, %p1377_p9 }
 0x2a2   : > { %p1167_p12 = por %p1166_p0, %p1165_p11 }
 0x2a3   : > { %p1163_p8 = pneg %p1162_p6 }
 0x2a5   : > { %p1168_p4 = pnand %p1167_p12, %p1163_p8 }
 0x2a7   : > { %1171 = shalt.err (!%p1168_p4)
}
 0x2a8   : > { %s1251_s24 = smov 128   ;;  %s1252_s26 = smov 8  }
 0x2a9   : > { %929 = dma.vmem_to_hbm [thread:$0]  (%p1377_p9), %s1480_s30, 256, %s1485_s7, %s689_s13, %s1251_s24, %s1251_s24, %s1252_s26  }
 0x2aa PF: > { %s719_s14 = sand.u32 1, %s1218_s18   ;;  %p1567_p3 = scmp.ne.s32.totalorder %s1550_s27, 0 }
 0x2ab   : > { %p1568_p7 = scmp.ge.s32.totalorder %s1238_s23, 2  ;;  %s720_s25 = scalar_lea.sflag [#allocation4], %s719_s14 }
 0x2ad   : > { %p946_p13 = pnand %p1568_p7, %p1567_p3 }
 0x2af   : > { %p947_p5 = pneg %p946_p13 }
 0x2b1   : > { %1213 = dma.done.wait (%p947_p5), %s720_s25, 256  }
 0x2b2   : > { %1215 = vsyncadd (%p947_p5), %s720_s25, 4294967040  ;;  %s25_s23 = sadd.s32 1, %s1238_s23   ;;  %s1569_s6 = sld [smem:[#allocation16_spill]] }
 0x2b3   : > { %p22_p10 = scmp.ge.s32.totalorder %s25_s23, 4   ;;  %s1570_s18 = smov %s1222_s19 }
 0x2b4   : > { %s1571_s19 = smov %s1226_s20  ;;  %s1572_s20 = smov %s1388_s11 }
 0x2b5   : > { %s1573_s21 = smov %s1234_s22  ;;  %24 = sbr.rel (!%p22_p10) target bundleno = 14 (0xe), region = 106 }
 0x2b8   : > { %s1574_s22 = smov %s1569_s6 }
 0x2ba   :  { %725 = vsyncpa [#allocation3], 1 }
 0x2bb   :  { %727 = vsyncpa [#allocation3 + $0x1], 1 }
 0x2bc   :  { %728 = vsyncpa [#allocation6], 1 }
 0x2bd   :  { %730 = vsyncpa [#allocation6 + $0x1], 1 }
 0x2be   :  { %731 = vsyncpa [#allocation9], 1 }
 0x2bf   :  { %732 = vsyncpa [#allocation4], 1 }
 0x2c0   :  { %734 = vsyncpa [#allocation4 + $0x1], 1 }

</bundles_post_ra>
